<compile_context>
chip_gen: v7x
topology: tpu7x:2x2x1
jax: 0.10.0
libtpu: 0.0.40
codegen_flags: <defaults>
</compile_context>

<pallas_src>
import jax
import jax.numpy as jnp
from jax.experimental import pallas as pl
from jax.experimental.pallas import tpu as pltpu

BN_EPS = 1e-5
_MiB = 1024 * 1024
_VMEM_BUDGET = 40 * _MiB  # safe scoped budget on every generation (v7x: 64 MiB physical)


def init_attribute_network_params(gamma, beta, weight, bias):
    """One-time (init-time) parameter preprocessing — NOT per forward call.

    Returns:
      gb : (2, D) f32 — stacked [gamma; beta] (single resident operand)
      wt : (D, N) f32 — linear weight, pre-transposed (canonical MXU RHS)
      b2 : (1, N) f32 — linear bias
    """
    n_labels = weight.shape[0]
    gb = jnp.stack([gamma, beta], axis=0).astype(jnp.float32)
    wt = jnp.asarray(weight, jnp.float32).T
    b2 = jnp.asarray(bias, jnp.float32).reshape(1, n_labels)
    return gb, wt, b2


# ---------------------------------------------------------------------------
# Path A: small batch — fully fused (BN stats + normalize + matmul), grid=(1,)
# ---------------------------------------------------------------------------
def _fused_bn_linear_kernel(x_ref, gb_ref, wt_ref, b_ref, o_ref):
    # x_ref : (B, D)   whole batch, native dtype
    # gb_ref: (2, D)   [gamma; beta]
    # wt_ref: (D, N)   linear weight (pre-transposed)
    # b_ref : (1, N)   linear bias
    # o_ref : (B, N)
    x = x_ref[...].astype(jnp.float32)           # cast in VMEM, f32 compute
    gb = gb_ref[...]
    gamma = gb[0:1, :]
    beta = gb[1:2, :]

    # Batch-global (train-mode) BN statistics, biased variance.
    mean = jnp.mean(x, axis=0, keepdims=True)                 # (1, D)
    var = jnp.mean((x - mean) ** 2, axis=0, keepdims=True)    # (1, D)
    scale = gamma * jax.lax.rsqrt(var + BN_EPS)
    shift = beta - mean * scale

    xn = x * scale + shift                       # == gamma*(x-mean)/std + beta
    out = jnp.dot(xn, wt_ref[...], preferred_element_type=jnp.float32)
    o_ref[...] = (out + b_ref[...]).astype(o_ref.dtype)


# ---------------------------------------------------------------------------
# Path B: large batch — BN folded into the weight ONCE in the wrapper; kernel
# is a plain [TB, D] @ [D, N] matmul + bias (canonical MXU operand layout).
# ---------------------------------------------------------------------------
def _matmul_bias_kernel(x_ref, w_ref, b_ref, o_ref):
    # x_ref: (TB, D) native dtype;  w_ref: (D, N) f32 BN-folded (resident)
    # b_ref: (1, N) f32 BN-folded;  o_ref: (TB, N)
    x = x_ref[...].astype(jnp.float32)
    out = jnp.dot(x, w_ref[...], preferred_element_type=jnp.float32)
    o_ref[...] = (out + b_ref[...]).astype(o_ref.dtype)


def _choose_batch_tile(B, D, N, x_itemsize):
    """Pick batch-tile rows from an explicit VMEM budget.

    Footprint per core ~ 2*TB*D*x_itemsize (double-buffered x tile)
                       + 2*TB*N*4          (double-buffered out tile)
                       + 4*(D*N + N)       (resident folded weight + bias).
    Also force >= 2 grid steps (so v7x's two TensorCores both get work) and
    cap at 1024 rows (past ~512 the HBM-roofline gain on single-TC v5e/v6e
    is marginal).
    """
    resident = 4 * (D * N + N)
    per_row = 2 * D * x_itemsize + 2 * N * 4
    tb_budget = max(8, ((_VMEM_BUDGET - resident) // per_row) // 8 * 8)
    tb_split = (((B + 1) // 2) + 7) // 8 * 8
    return int(max(8, min(1024, tb_budget, tb_split)))


def attribute_network_forward(x, gb, wt, b2):
    """Forward of AttributeNetwork: BatchNorm1d (train mode) -> Linear.

    x : (B, D) in its native dtype (f32 or bf16).
    gb, wt, b2 : from init_attribute_network_params (init-time, reused).
    """
    B, D = x.shape
    N = wt.shape[1]
    x_bytes = B * D * x.dtype.itemsize

    if B <= 512 and x_bytes + 4 * B * N <= 16 * _MiB:
        # ---- Path A: one fused kernel, whole batch resident in VMEM. ----
        return pl.pallas_call(
            _fused_bn_linear_kernel,
            out_shape=jax.ShapeDtypeStruct((B, N), jnp.float32),
            grid_spec=pltpu.PrefetchScalarGridSpec(
                num_scalar_prefetch=0,
                grid=(1,),
                in_specs=[
                    pl.BlockSpec((B, D), lambda i: (0, 0)),   # x (full batch)
                    pl.BlockSpec((2, D), lambda i: (0, 0)),   # [gamma; beta]
                    pl.BlockSpec((D, N), lambda i: (0, 0)),   # W.T (resident)
                    pl.BlockSpec((1, N), lambda i: (0, 0)),   # bias
                ],
                out_specs=pl.BlockSpec((B, N), lambda i: (0, 0)),
            ),
            compiler_params=pltpu.CompilerParams(
                dimension_semantics=("arbitrary",),
                vmem_limit_bytes=32 * _MiB,
            ),
        )(x, gb, wt, b2)

    # ---- Path B: batch-tiled matmul with the BN fold hoisted to the wrapper.
    # Batch-global stats are a cheap fused XLA reduction (exact under batch
    # tiling); the fold is done ONCE per call, never per tile.
    mean = jnp.mean(x.astype(jnp.float32), axis=0, keepdims=True)             # (1, D)
    var = jnp.mean((x.astype(jnp.float32) - mean) ** 2, axis=0, keepdims=True)
    scale = gb[0:1, :] * jax.lax.rsqrt(var + BN_EPS)                          # (1, D)
    shift = gb[1:2, :] - mean * scale                                         # (1, D)
    w_eff = wt * scale.reshape(D, 1)                                          # (D, N)
    b_eff = shift @ wt + b2                                                   # (1, N)

    TB = _choose_batch_tile(B, D, N, x.dtype.itemsize)
    grid = (pl.cdiv(B, TB),)
    # NOTE: if B % TB != 0 the last batch tile is partial; this is correct
    # because rows are independent, the stats were computed over the true B,
    # and Pallas masks the out-of-bounds output rows.
    vmem_limit = int(min(48 * _MiB,
                         max(16 * _MiB,
                             4 * (D * N + N)
                             + TB * (2 * D * x.dtype.itemsize + 8 * N)
                             + 8 * _MiB)))

    return pl.pallas_call(
        _matmul_bias_kernel,
        out_shape=jax.ShapeDtypeStruct((B, N), jnp.float32),
        grid_spec=pltpu.PrefetchScalarGridSpec(
            num_scalar_prefetch=0,
            grid=grid,
            in_specs=[
                pl.BlockSpec((TB, D), lambda i: (i, 0)),     # x batch tile
                pl.BlockSpec((D, N), lambda i: (0, 0)),      # folded weight (resident)
                pl.BlockSpec((1, N), lambda i: (0, 0)),      # folded bias (resident)
            ],
            out_specs=pl.BlockSpec((TB, N), lambda i: (i, 0)),
        ),
        compiler_params=pltpu.CompilerParams(
            dimension_semantics=("parallel",),   # tiles independent (stats precomputed)
            vmem_limit_bytes=vmem_limit,
        ),
    )(x, w_eff, b_eff)


def reference_forward(x, gamma, beta, weight, bias):
    x = x.astype(jnp.float32)
    mean = jnp.mean(x, axis=0, keepdims=True)
    var = jnp.mean((x - mean) ** 2, axis=0, keepdims=True)
    xn = (x - mean) / jnp.sqrt(var + BN_EPS) * gamma + beta
    return xn @ weight.astype(jnp.float32).T + bias


if __name__ == "__main__":
    # Small shapes consistent with the module: x is (batch, input_size).
    batch = 8
    input_size = 32
    n_labels = 16

    key = jax.random.PRNGKey(0)
    kx, kw, kb, kx2 = jax.random.split(key, 4)

    x = jax.random.normal(kx, (batch, input_size), dtype=jnp.float32)

    # Deterministic parameter init (mimicking nn.Linear's uniform(-1/sqrt(D), 1/sqrt(D))).
    bound = 1.0 / (input_size ** 0.5)
    weight = jax.random.uniform(kw, (n_labels, input_size),
                                minval=-bound, maxval=bound, dtype=jnp.float32)
    bias = jax.random.uniform(kb, (n_labels,),
                              minval=-bound, maxval=bound, dtype=jnp.float32)
    # BatchNorm1d default affine init: gamma=1, beta=0.
    gamma = jnp.ones((input_size,), dtype=jnp.float32)
    beta = jnp.zeros((input_size,), dtype=jnp.float32)

    # Init-time parameter preprocessing (once, not per forward call).
    gb, wt, b2 = init_attribute_network_params(gamma, beta, weight, bias)

    fwd = jax.jit(attribute_network_forward)

    # Small batch -> fused single-tile path (stats computed inside the kernel).
    out = jax.block_until_ready(fwd(x, gb, wt, b2))
    ref = reference_forward(x, gamma, beta, weight, bias)
    assert out.shape == (batch, n_labels)
    assert jnp.allclose(out, ref, atol=1e-4, rtol=1e-4), "fused path mismatch vs reference"

    # Larger batch -> tiled path (>= 2 grid steps, BN fold hoisted to wrapper).
    x_big = jax.random.normal(kx2, (1024, input_size), dtype=jnp.float32)
    out_big = jax.block_until_ready(fwd(x_big, gb, wt, b2))
    ref_big = reference_forward(x_big, gamma, beta, weight, bias)
    assert out_big.shape == (1024, n_labels)
    assert jnp.allclose(out_big, ref_big, atol=1e-3, rtol=1e-3), "tiled path mismatch vs reference"

    print("KERNEL_OK")
</pallas_src>

<mosaic_0001>
module attributes {stable_mosaic.version = 11 : i64} {
  func.func @_fused_bn_linear_kernel(%arg0: i32, %arg1: memref<8x32xf32, #tpu.memory_space<vmem>>, %arg2: memref<2x32xf32, #tpu.memory_space<vmem>>, %arg3: memref<32x16xf32, #tpu.memory_space<vmem>>, %arg4: memref<1x16xf32, #tpu.memory_space<vmem>>, %arg5: memref<8x16xf32, #tpu.memory_space<vmem>>) attributes {dimension_semantics = [#tpu.dimension_semantics<arbitrary>], iteration_bounds = array<i64: 1>, scalar_prefetch = 0 : i64, scratch_operands = 0 : i64, tpu.core_type = #tpu.core_type<tc>, window_params = [{pipeline_mode = #tpu.pipeline_mode<synchronous>, transform_indices = @transform_0, window_bounds = array<i64: 8, 32>}, {pipeline_mode = #tpu.pipeline_mode<synchronous>, transform_indices = @transform_1, window_bounds = array<i64: 2, 32>}, {pipeline_mode = #tpu.pipeline_mode<synchronous>, transform_indices = @transform_2, window_bounds = array<i64: 32, 16>}, {pipeline_mode = #tpu.pipeline_mode<synchronous>, transform_indices = @transform_3, window_bounds = array<i64: 1, 16>}, {pipeline_mode = #tpu.pipeline_mode<synchronous>, transform_indices = @transform_4, window_bounds = array<i64: 8, 16>}]} {
    %c0 = arith.constant 0 : index
    %c0_0 = arith.constant 0 : index
    %0 = vector.load %arg1[%c0, %c0_0] : memref<8x32xf32, #tpu.memory_space<vmem>>, vector<8x32xf32>
    %c0_1 = arith.constant 0 : index
    %c0_2 = arith.constant 0 : index
    %1 = vector.load %arg2[%c0_1, %c0_2] : memref<2x32xf32, #tpu.memory_space<vmem>>, vector<2x32xf32>
    %2 = vector.extract_strided_slice %1 {offsets = [0, 0], sizes = [1, 32], strides = [1, 1]} : vector<2x32xf32> to vector<1x32xf32>
    %3 = vector.extract_strided_slice %1 {offsets = [1, 0], sizes = [1, 32], strides = [1, 1]} : vector<2x32xf32> to vector<1x32xf32>
    %cst = arith.constant dense<0.000000e+00> : vector<32xf32>
    %4 = vector.multi_reduction <add>, %0, %cst [0] : vector<8x32xf32> to vector<32xf32>
    %5 = vector.shape_cast %4 : vector<32xf32> to vector<1x32xf32>
    %cst_3 = arith.constant 8.000000e+00 : f32
    %6 = vector.broadcast %cst_3 : f32 to vector<1x32xf32>
    %7 = arith.divf %5, %6 : vector<1x32xf32>
    %8 = vector.broadcast %7 : vector<1x32xf32> to vector<8x32xf32>
    %9 = arith.subf %0, %8 : vector<8x32xf32>
    %10 = arith.mulf %9, %9 : vector<8x32xf32>
    %cst_4 = arith.constant dense<0.000000e+00> : vector<32xf32>
    %11 = vector.multi_reduction <add>, %10, %cst_4 [0] : vector<8x32xf32> to vector<32xf32>
    %12 = vector.shape_cast %11 : vector<32xf32> to vector<1x32xf32>
    %cst_5 = arith.constant 8.000000e+00 : f32
    %13 = vector.broadcast %cst_5 : f32 to vector<1x32xf32>
    %14 = arith.divf %12, %13 : vector<1x32xf32>
    %cst_6 = arith.constant 9.99999974E-6 : f32
    %15 = vector.broadcast %cst_6 : f32 to vector<1x32xf32>
    %16 = arith.addf %14, %15 : vector<1x32xf32>
    %17 = math.rsqrt %16 : vector<1x32xf32>
    %18 = arith.mulf %2, %17 : vector<1x32xf32>
    %19 = arith.mulf %7, %18 : vector<1x32xf32>
    %20 = arith.subf %3, %19 : vector<1x32xf32>
    %21 = vector.broadcast %18 : vector<1x32xf32> to vector<8x32xf32>
    %22 = arith.mulf %0, %21 : vector<8x32xf32>
    %23 = vector.broadcast %20 : vector<1x32xf32> to vector<8x32xf32>
    %24 = arith.addf %22, %23 : vector<8x32xf32>
    %c0_7 = arith.constant 0 : index
    %c0_8 = arith.constant 0 : index
    %25 = vector.load %arg3[%c0_7, %c0_8] : memref<32x16xf32, #tpu.memory_space<vmem>>, vector<32x16xf32>
    %cst_9 = arith.constant dense<0.000000e+00> : vector<8x16xf32>
    %26 = tpu.matmul %24, %25, %cst_9 {dimension_numbers = #tpu.dot_dimension_numbers<[1], [0], [0], [1], [0, 0, 1, 1], [], []>} : vector<8x32xf32>, vector<32x16xf32>, vector<8x16xf32> -> vector<8x16xf32>
    %c0_10 = arith.constant 0 : index
    %c0_11 = arith.constant 0 : index
    %27 = vector.load %arg4[%c0_10, %c0_11] : memref<1x16xf32, #tpu.memory_space<vmem>>, vector<1x16xf32>
    %28 = vector.broadcast %27 : vector<1x16xf32> to vector<8x16xf32>
    %29 = arith.addf %26, %28 : vector<8x16xf32>
    %c0_12 = arith.constant 0 : index
    %c0_13 = arith.constant 0 : index
    %30 = vector.load %arg5[%c0_12, %c0_13] : memref<8x16xf32, #tpu.memory_space<vmem>>, vector<8x16xf32>
    tpu.vector_store %arg5[%c0_12, %c0_13], %29 {strides = array<i32>} : memref<8x16xf32, #tpu.memory_space<vmem>>, vector<8x16xf32>,
    return
  }
  func.func @transform_0(%arg0: i32) -> (i32, i32) {
    %c0_i32 = arith.constant 0 : i32
    %c0_i32_0 = arith.constant 0 : i32
    %c0_i32_1 = arith.constant 0 : i32
    return %c0_i32, %c0_i32_0 : i32, i32
  }
  func.func @transform_1(%arg0: i32) -> (i32, i32) {
    %c0_i32 = arith.constant 0 : i32
    %c0_i32_0 = arith.constant 0 : i32
    %c0_i32_1 = arith.constant 0 : i32
    return %c0_i32, %c0_i32_0 : i32, i32
  }
  func.func @transform_2(%arg0: i32) -> (i32, i32) {
    %c0_i32 = arith.constant 0 : i32
    %c0_i32_0 = arith.constant 0 : i32
    %c0_i32_1 = arith.constant 0 : i32
    return %c0_i32, %c0_i32_0 : i32, i32
  }
  func.func @transform_3(%arg0: i32) -> (i32, i32) {
    %c0_i32 = arith.constant 0 : i32
    %c0_i32_0 = arith.constant 0 : i32
    %c0_i32_1 = arith.constant 0 : i32
    return %c0_i32, %c0_i32_0 : i32, i32
  }
  func.func @transform_4(%arg0: i32) -> (i32, i32) {
    %c0_i32 = arith.constant 0 : i32
    %c0_i32_0 = arith.constant 0 : i32
    %c0_i32_1 = arith.constant 0 : i32
    return %c0_i32, %c0_i32_0 : i32, i32
  }
}

</mosaic_0001>

<bundles_post_ra>
// kernel: attribute_network_forward.1
= control target key start
LH: loop header
LB: loop body
LE: loop exit
PB: predicated region body
PF: predicated region fallthrough
CT: control target
= control target key end

     0   :  { %v212_v3 = vmov 0.0|0.0   ;;  %vm213_vm0 = vmmov 0   ;;  %v214_v6 = vmov 0.0   ;;  %vm20_vm1 = vcmask 261120   ;;  %s277_s0 = inlined_call_operand.vmem [shape: f32[8,32], index: 0, kind: input, shape index: {}]   ;;  %s278_s1 = inlined_call_operand.vmem [shape: f32[2,32], index: 1, kind: input, shape index: {}]   ;;  %s279_s2 = inlined_call_operand.vmem [shape: f32[32,16], index: 2, kind: input, shape index: {}]   ;;  %s280_s3 = inlined_call_operand.vmem [shape: f32[1,16], index: 3, kind: input, shape index: {}]   ;;  %s281_s4 = inlined_call_operand.hbm [shape: f32[8,16], index: 4, kind: output, shape index: {}]  }
   0x1   :  { %v58_v0 = vld [vmem:[%s279_s2] sm:$0xff]  ;;  %v59_v1 = vld [vmem:[%s279_s2 + $0x8] sm:$0xff]  ;;  %v60_v2 = vld [vmem:[%s279_s2 + $0x10] sm:$0xff]  ;;  %176 = vmatprep.subr.bf16.mxu0 %v212_v3  ;;  %173 = vmatprep.mubr.msk.f32.mxu0 %vm213_vm0, %v214_v6 }
   0x2   :  { %v177_v4 = vpack.c.bf16 %v59_v1, %v58_v0  ;;  %v61_v5 = vld [vmem:[%s279_s2 + $0x18] sm:$0xff]  ;;  %v18_v7 = vld [vmem:[%s277_s0] sm:$0xff] }
   0x3   :  { %v21_v8 = vsel %vm20_vm1, %v18_v7, 0.0 }
   0x4   :  { %9 = vsyncpa [#allocation3], 0  ;;  %178 = vmatpush3.bf16.msra.mxu0 %v177_v4  ;;  %v180_v9 = vpack.c.bf16 %v61_v5, %v60_v2  ;;  %v22_v10 = vrot.slane %v21_v8, 4  ;;  %v48_v28 = vlaneseq  ;;  %v19_v30 = vld [vmem:[%s278_s1] sm:$0x3]  ;;  %s215_s27 = smov [#allocation2]  }
   0x5   :  { %179 = vmatprep.subr.bf16.mxu0 %v212_v3  ;;  %v158_v42 = vld [vmem:[%s280_s3] ss:$0 sm:$0xff]  ;;  %s150_s28 = sshll.u32 %s215_s27, 4  ;;  %vm142_vm2 = vcmask 130048   ;;  %s151_s28 = int_to_ptr.vmem [resolvable:$true] %s150_s28 }
   0x6   :  { %v23_v11 = vadd.f32 %v22_v10, %v21_v8  ;;  %v49_v29 = vshrl.u32 %v48_v28, 7  ;;  %s188_s1 = scalar_lea.vmem %s151_s28, 128  ;;  %p193_p1 = scmp.lt.s32.totalorder %s151_s28, %s151_s28 }
   0x7   :  { %p189_p0 = scmp.ne.s32.totalorder %s151_s28, %s188_s1  ;;  %p194_p2 = scmp.lt.s32.totalorder %s188_s1, %s188_s1 }
   0x8   :  { %181 = vmatpush3.bf16.msra.mxu0 %v180_v9  ;;  %v24_v12 = vrot.slane %v23_v11, 2  ;;  %v50_v31 = vsub.s32 0, %v49_v29  ;;  %v55_v37 = vsub.s32 1, %v49_v29 }
   0x9   :  { %p195_p3 = por %p194_p2, %p193_p1 }
   0xa   :  { %v25_v13 = vadd.f32 %v24_v12, %v23_v11 }
   0xb   :  { %p196_p4 = pnand %p195_p3, %p189_p0 }
   0xc   :  { %v26_v14 = vrot.slane %v25_v13, 1 }
   0xe   :  { %v27_v15 = vadd.f32 %v26_v14, %v25_v13 }
  0x10   :  { %v29_v16 = vmul.f32 0.125, %v27_v15 }
  0x12   :  { %v30_v17 = vsub.f32 %v18_v7, %v29_v16 }
  0x14   :  { %v31_v18 = vmul.f32 %v30_v17, %v30_v17 }
  0x16   :  { %v32_v19 = vsel %vm20_vm1, %v31_v18, 0.0 }
  0x17   :  { %v33_v20 = vrot.slane %v32_v19, 4 }
  0x19   :  { %v34_v21 = vadd.f32 %v33_v20, %v32_v19 }
  0x1b   :  { %v35_v22 = vrot.slane %v34_v21, 2 }
  0x1d   :  { %v36_v23 = vadd.f32 %v35_v22, %v34_v21 }
  0x1f   :  { %v37_v24 = vrot.slane %v36_v23, 1 }
  0x21   :  { %v38_v25 = vadd.f32 %v37_v24, %v36_v23 }
  0x23   :  { %v39_v26 = vmul.f32 0.125, %v38_v25 }
  0x25   :  { %v40_v27 = vadd.f32 1e-05, %v39_v26 }
  0x27   :  { %186 = vrsqrt.f32 %v40_v27 }
  0x31   :  { %v187_v32 = vpop.eup %186 }
  0x32   :  { %v42_v33 = vmul.f32 %v187_v32, %v19_v30 }
  0x34   :  { %v43_v34 = vmul.f32 %v42_v33, %v29_v16  ;;  %v51_v35 = vrot.slane %v42_v33, %v50_v31 }
  0x36   :  { %v45_v36 = vrot.slane %v43_v34, 7  ;;  %v52_v39 = vmul.f32 %v51_v35, %v18_v7 }
  0x38   :  { %v47_v38 = vsub.f32 %v19_v30, %v45_v36 }
  0x3a   :  { %v56_v40 = vrot.slane %v47_v38, %v55_v37 }
  0x3c   :  { %v57_v41 = vadd.f32 %v56_v40, %v52_v39 }
  0x3e   :  { %174 = vmatmul.mubr.msk.f32.vlgmr.msra.gmra.mrb[0].mxu0 %vm20_vm1, %v57_v41 }
 0x111   :  { %v138_v43 = vpop.f32.mrb[0].mxu0 }
 0x112   :  { %v139_v44 = vadd.f32 %v158_v42, %v138_v43  ;;  %v175_v45 = vpop.f32.mrb[1].mxu0 }
 0x114   :  { %143 = vst.msk [vmem:[#allocation2] sm:$0xff] %vm142_vm2, %v139_v44 }
 0x115   :  { %199 = shalt.err (!%p196_p4)
}
 0x116   :  { %s200_s5 = scalar_lea.hbm %s281_s4, 128 }
 0x117   :  { %p201_p5 = scmp.ne.s32.totalorder %s281_s4, %s200_s5  ;;  %p204_p6 = scmp.lt.u32.totalorder %s200_s5, %s281_s4 }
 0x119   :  { %p206_p7 = pnand %p204_p6, %p201_p5 }
 0x11b   :  { %209 = shalt.err (!%p206_p7)
}
 0x11c   :  { %153 = dma.vmem_to_hbm [thread:$0]  %s151_s28, 128, %s281_s4, [#allocation3]  }
 0x11d   :  { %210 = dma.done.wait [#allocation3], 128  }
 0x11e   :  { %211 = vsyncadd [#allocation3], 4294967168 }
 0x11f   :  { %157 = vsyncpa [#allocation3], 1 }

</bundles_post_ra>
